<compile_context>
chip_gen: v6e
topology: v6e:2x2x1
jax: 0.10.0
libtpu: 0.0.40
codegen_flags: <defaults>
</compile_context>

<pallas_src>
import functools

import jax
import jax.numpy as jnp
from jax.experimental import pallas as pl
from jax.experimental.pallas import tpu as pltpu


# Conservative scoped-VMEM request: raises v5e's 16 MiB default, matches the
# v6e/v7x default, and leaves >= 32 MiB headroom on v7x's 64 MiB part.
_VMEM_LIMIT_BYTES = 32 * 1024 * 1024
_TILE_BUDGET_BYTES = int(_VMEM_LIMIT_BYTES * 0.6)
_MAX_TILE_ROWS = 1024  # measured ~86% of HBM roofline by this block size


def _mse_loss_kernel(student_ref, teacher_ref, partial_ref, *,
                     rows_total, tile_rows, needs_mask):
    # Upcast once per tile; all math in f32.
    s = student_ref[...].astype(jnp.float32)          # [TB, C]
    t = teacher_ref[...].astype(jnp.float32)          # [TB, C]

    if needs_mask:
        # Zero out tail rows that lie past the real batch.  softmax(0-row)
        # is identical (uniform) for student and teacher, so masked rows
        # contribute exactly 0 to the squared difference.
        row0 = pl.program_id(0) * tile_rows
        rows = row0 + jax.lax.broadcasted_iota(jnp.int32, s.shape, 0)
        valid = rows < rows_total
        s = jnp.where(valid, s, 0.0)
        t = jnp.where(valid, t, 0.0)

    # softmax(student) along the class axis; divide only the [TB, 1] row sums.
    s_exp = jnp.exp(s - jnp.max(s, axis=1, keepdims=True))
    s_p = s_exp * (1.0 / jnp.sum(s_exp, axis=1, keepdims=True))

    # softmax(teacher) along the class axis.
    t_exp = jnp.exp(t - jnp.max(t, axis=1, keepdims=True))
    t_p = t_exp * (1.0 / jnp.sum(t_exp, axis=1, keepdims=True))

    d = s_p - t_p
    # Per-block lane-dense partial: reduce only over the batch (sublane) axis.
    partial_ref[...] = jnp.sum(d * d, axis=0, keepdims=True)   # [1, C]


def _sublane_align(itemsize):
    if itemsize >= 4:
        return 8
    if itemsize == 2:
        return 16
    return 32


def _pick_batch_tile(batch, num_classes, itemsize):
    """VMEM-budget- and dtype-aware batch tile.

    2 inputs x 2 pipeline buffers x TB x C x itemsize must stay within the
    tile budget; TB is kept a multiple of the packed sublane alignment and
    capped at _MAX_TILE_ROWS (diminishing returns beyond that).
    """
    align = _sublane_align(itemsize)
    if batch <= align:
        return batch  # full batch dim in a single block (always legal)

    bytes_per_row = 4 * num_classes * itemsize   # 2 inputs * 2 buffers
    max_rows = max(_TILE_BUDGET_BYTES // max(bytes_per_row, 1), align)

    tb = min(max_rows, _MAX_TILE_ROWS)
    tb = max((tb // align) * align, align)
    # Don't exceed the aligned batch extent (avoids a pointless oversize block).
    tb = min(tb, (batch // align) * align)
    return max(tb, align)


def mse_loss(student_logits, teacher_logits):
    """Pallas TPU implementation of MSE_Loss.forward.

    student_logits: [B, C] float (output_batch), any float dtype
    teacher_logits: [B, C] float (teacher_outputs)
    returns scalar float32 loss.
    """
    assert student_logits.shape == teacher_logits.shape
    B, C = student_logits.shape
    itemsize = jnp.dtype(student_logits.dtype).itemsize
    TB = _pick_batch_tile(B, C, itemsize)
    num_blocks = pl.cdiv(B, TB)
    needs_mask = (B % TB) != 0

    kernel = functools.partial(
        _mse_loss_kernel, rows_total=B, tile_rows=TB, needs_mask=needs_mask)

    partials = pl.pallas_call(
        kernel,
        out_shape=jax.ShapeDtypeStruct((num_blocks, C), jnp.float32),
        grid=(num_blocks,),
        in_specs=[
            pl.BlockSpec((TB, C), lambda i: (i, 0)),   # student tile
            pl.BlockSpec((TB, C), lambda i: (i, 0)),   # teacher tile
        ],
        out_specs=pl.BlockSpec((1, C), lambda i: (i, 0)),
        compiler_params=pltpu.CompilerParams(
            dimension_semantics=("parallel",),          # megacore-friendly
            vmem_limit_bytes=_VMEM_LIMIT_BYTES,
        ),
    )(student_logits, teacher_logits)

    # Tiny epilogue: one cross-lane reduce over (num_blocks, C) + scale.
    return jnp.sum(partials) * jnp.float32(1.0 / B)


def _mse_loss_ref(student_logits, teacher_logits):
    """Pure-JAX reference mirroring the PyTorch module exactly."""
    B = student_logits.shape[0]
    s_p = jax.nn.softmax(student_logits.astype(jnp.float32), axis=1)
    t_p = jax.nn.softmax(teacher_logits.astype(jnp.float32), axis=1)
    return jnp.sum((s_p - t_p) ** 2) / B


if __name__ == "__main__":
    # Deterministic synthetic inputs; lane-dense class axis (multiple of 128).
    batch = 8
    num_classes = 128

    key = jax.random.PRNGKey(0)
    k1, k2 = jax.random.split(key, 2)
    student = jax.random.normal(k1, (batch, num_classes), dtype=jnp.float32)
    teacher = jax.random.normal(k2, (batch, num_classes), dtype=jnp.float32)

    loss = mse_loss(student, teacher)
    loss = jax.block_until_ready(loss)

    ref = _mse_loss_ref(student, teacher)
    assert jnp.allclose(loss, ref, rtol=1e-5, atol=1e-6), (loss, ref)

    # Also exercise a non-divisible batch (tail-masking path).
    batch2 = 13
    s2 = jax.random.normal(k1, (batch2, num_classes), dtype=jnp.float32)
    t2 = jax.random.normal(k2, (batch2, num_classes), dtype=jnp.float32)
    loss2 = jax.block_until_ready(mse_loss(s2, t2))
    ref2 = _mse_loss_ref(s2, t2)
    assert jnp.allclose(loss2, ref2, rtol=1e-5, atol=1e-6), (loss2, ref2)

    print("KERNEL_OK")
</pallas_src>

<mosaic_0001>
module attributes {stable_mosaic.version = 11 : i64} {
  func.func @_mse_loss_kernel(%arg0: i32, %arg1: memref<8x128xf32, #tpu.memory_space<vmem>>, %arg2: memref<8x128xf32, #tpu.memory_space<vmem>>, %arg3: memref<1x128xf32, #tpu.memory_space<vmem>>) attributes {dimension_semantics = [#tpu.dimension_semantics<parallel>], iteration_bounds = array<i64: 1>, scalar_prefetch = 0 : i64, scratch_operands = 0 : i64, tpu.core_type = #tpu.core_type<tc>, window_params = [{transform_indices = @transform_0, window_bounds = array<i64: 8, 128>}, {transform_indices = @transform_1, window_bounds = array<i64: 8, 128>}, {transform_indices = @transform_2, window_bounds = array<i64: 1, 128>}]} {
    %c0 = arith.constant 0 : index
    %c0_0 = arith.constant 0 : index
    %0 = vector.load %arg1[%c0, %c0_0] : memref<8x128xf32, #tpu.memory_space<vmem>>, vector<8x128xf32>
    %c0_1 = arith.constant 0 : index
    %c0_2 = arith.constant 0 : index
    %1 = vector.load %arg2[%c0_1, %c0_2] : memref<8x128xf32, #tpu.memory_space<vmem>>, vector<8x128xf32>
    %cst = arith.constant dense<0xFF800000> : vector<8xf32>
    %2 = vector.multi_reduction <maximumf>, %0, %cst [1] : vector<8x128xf32> to vector<8xf32>
    %3 = vector.shape_cast %2 : vector<8xf32> to vector<8x1xf32>
    %4 = vector.broadcast %3 : vector<8x1xf32> to vector<8x128xf32>
    %5 = arith.subf %0, %4 : vector<8x128xf32>
    %6 = math.exp %5 : vector<8x128xf32>
    %cst_3 = arith.constant dense<0.000000e+00> : vector<8xf32>
    %7 = vector.multi_reduction <add>, %6, %cst_3 [1] : vector<8x128xf32> to vector<8xf32>
    %8 = vector.shape_cast %7 : vector<8xf32> to vector<8x1xf32>
    %cst_4 = arith.constant 1.000000e+00 : f32
    %9 = vector.broadcast %cst_4 : f32 to vector<8x1xf32>
    %10 = arith.divf %9, %8 : vector<8x1xf32>
    %11 = vector.broadcast %10 : vector<8x1xf32> to vector<8x128xf32>
    %12 = arith.mulf %6, %11 : vector<8x128xf32>
    %cst_5 = arith.constant dense<0xFF800000> : vector<8xf32>
    %13 = vector.multi_reduction <maximumf>, %1, %cst_5 [1] : vector<8x128xf32> to vector<8xf32>
    %14 = vector.shape_cast %13 : vector<8xf32> to vector<8x1xf32>
    %15 = vector.broadcast %14 : vector<8x1xf32> to vector<8x128xf32>
    %16 = arith.subf %1, %15 : vector<8x128xf32>
    %17 = math.exp %16 : vector<8x128xf32>
    %cst_6 = arith.constant dense<0.000000e+00> : vector<8xf32>
    %18 = vector.multi_reduction <add>, %17, %cst_6 [1] : vector<8x128xf32> to vector<8xf32>
    %19 = vector.shape_cast %18 : vector<8xf32> to vector<8x1xf32>
    %cst_7 = arith.constant 1.000000e+00 : f32
    %20 = vector.broadcast %cst_7 : f32 to vector<8x1xf32>
    %21 = arith.divf %20, %19 : vector<8x1xf32>
    %22 = vector.broadcast %21 : vector<8x1xf32> to vector<8x128xf32>
    %23 = arith.mulf %17, %22 : vector<8x128xf32>
    %24 = arith.subf %12, %23 : vector<8x128xf32>
    %25 = arith.mulf %24, %24 : vector<8x128xf32>
    %cst_8 = arith.constant dense<0.000000e+00> : vector<128xf32>
    %26 = vector.multi_reduction <add>, %25, %cst_8 [0] : vector<8x128xf32> to vector<128xf32>
    %27 = vector.shape_cast %26 : vector<128xf32> to vector<1x128xf32>
    %c0_9 = arith.constant 0 : index
    %c0_10 = arith.constant 0 : index
    %28 = vector.load %arg3[%c0_9, %c0_10] : memref<1x128xf32, #tpu.memory_space<vmem>>, vector<1x128xf32>
    tpu.vector_store %arg3[%c0_9, %c0_10], %27 {strides = array<i32>} : memref<1x128xf32, #tpu.memory_space<vmem>>, vector<1x128xf32>,
    return
  }
  func.func @transform_0(%arg0: i32) -> (i32, i32) {
    %c0_i32 = arith.constant 0 : i32
    %c0_i32_0 = arith.constant 0 : i32
    return %arg0, %c0_i32 : i32, i32
  }
  func.func @transform_1(%arg0: i32) -> (i32, i32) {
    %c0_i32 = arith.constant 0 : i32
    %c0_i32_0 = arith.constant 0 : i32
    return %arg0, %c0_i32 : i32, i32
  }
  func.func @transform_2(%arg0: i32) -> (i32, i32) {
    %c0_i32 = arith.constant 0 : i32
    %c0_i32_0 = arith.constant 0 : i32
    return %arg0, %c0_i32 : i32, i32
  }
}

</mosaic_0001>

<bundles_post_ra>
// kernel: tpu_custom_call.1
= control target key start
LH: loop header
LB: loop body
LE: loop exit
PB: predicated region body
PF: predicated region fallthrough
CT: control target
= control target key end

     0   :  { %7 = vsyncpa [#allocation3], 0  ;;  %s187_s0 = inlined_call_operand.hbm [shape: f32[8,128], index: 0, kind: input, shape index: {}]   ;;  %s188_s1 = inlined_call_operand.hbm [shape: f32[8,128], index: 1, kind: input, shape index: {}]   ;;  %s189_s2 = inlined_call_operand.hbm [shape: f32[1,128], index: 2, kind: output, shape index: {}]  }
   0x1   :  { %8 = vsyncpa [#allocation6], 0 }
   0x2   :  { %9 = vsyncpa [#allocation4], 0  ;;  %s160_s9 = smov [#allocation2]   ;;  %s161_s11 = smov [#allocation5]  }
   0x3   :  { %s16_s10 = sshll.u32 %s160_s9, 4  ;;  %s26_s12 = sshll.u32 %s161_s11, 4  ;;  %s17_s10 = int_to_ptr.vmem [resolvable:$true] %s16_s10  ;;  %s27_s12 = int_to_ptr.vmem [resolvable:$true] %s26_s12 }
   0x4   :  { %s102_s13 = scalar_lea.vmem %s17_s10, 128  ;;  %p107_p1 = scmp.lt.s32.totalorder %s17_s10, %s17_s10 }
   0x5   :  { %p103_p0 = scmp.ne.s32.totalorder %s17_s10, %s102_s13  ;;  %p108_p2 = scmp.lt.s32.totalorder %s102_s13, %s102_s13 }
   0x7   :  { %p109_p3 = por %p108_p2, %p107_p1 }
   0x9   :  { %p110_p4 = pnand %p109_p3, %p103_p0 }
   0xb   :  { %113 = shalt.err (!%p110_p4)
}
   0xc   :  { %19 = dma.hbm_to_vmem [thread:$0]  %s187_s0, 128, %s17_s10, [#allocation3]  }
   0xd   :  { %s122_s16 = scalar_lea.vmem %s27_s12, 128  ;;  %p127_p6 = scmp.lt.s32.totalorder %s27_s12, %s27_s12 }
   0xe   :  { %p123_p5 = scmp.ne.s32.totalorder %s27_s12, %s122_s16  ;;  %p128_p7 = scmp.lt.s32.totalorder %s122_s16, %s122_s16 }
  0x10   :  { %p129_p8 = por %p128_p7, %p127_p6 }
  0x12   :  { %p130_p9 = pnand %p129_p8, %p123_p5 }
  0x14   :  { %133 = shalt.err (!%p130_p9)
}
  0x15   :  { %29 = dma.hbm_to_vmem [thread:$0]  %s188_s1, 128, %s27_s12, [#allocation6]  }
  0x16   :  { %154 = dma.done.wait [#allocation3], 128  }
  0x17   :  { %155 = vsyncadd [#allocation3], 4294967168 }
  0x18   :  { %156 = dma.done.wait [#allocation6], 128  }
  0x19   :  { %157 = vsyncadd [#allocation6], 4294967168  ;;  %v36_v0 = vld [vmem:[#allocation2] sm:$0xff]  ;;  %v37_v1 = vld [vmem:[#allocation5] sm:$0xff]  ;;  %s162_s0 = smov [#allocation7]  }
  0x1a   :  { %38 = vmax.xlane.f32.xlu0 %v36_v0  ;;  %s73_s1 = sshll.u32 %s162_s0, 4  ;;  %s74_s1 = int_to_ptr.vmem [resolvable:$true] %s73_s1 }
  0x1b   :  { %s134_s19 = scalar_lea.vmem %s74_s1, 16  ;;  %s138_s20 = scalar_lea.vmem %s74_s1, 32 }
  0x1c   :  { %p135_p10 = scmp.ne.s32.totalorder %s74_s1, %s134_s19  ;;  %p139_p11 = scmp.lt.s32.totalorder %s74_s1, %s74_s1 }
  0x1d   :  { %p140_p12 = scmp.lt.s32.totalorder %s138_s20, %s134_s19 }
  0x1e   :  { %48 = vmax.xlane.f32.xlu0 %v37_v1 }
  0x1f   :  { %p141_p13 = por %p140_p12, %p139_p11 }
  0x21   :  { %p142_p0 = pnand %p141_p13, %p135_p10 }
  0xa3   :  { %v39_v2 = vpop.xlane.xlu0 %38 }
  0xa4   :  { %v40_v3 = vsub.f32 %v36_v0, %v39_v2 }
  0xa6   :  { %v41_v4 = vmul.f32 1.442695, %v40_v3 }
  0xa7   :  { %v49_v5 = vpop.xlane.xlu0 %48 }
  0xa8   :  { %86 = vpow2.f32 %v41_v4  ;;  %v50_v6 = vsub.f32 %v37_v1, %v49_v5 }
  0xaa   :  { %v51_v7 = vmul.f32 1.442695, %v50_v6 }
  0xac   :  { %88 = vpow2.f32 %v51_v7 }
  0xb5   :  { %v87_v8 = vpop.eup %86 }
  0xb6   :  { %43 = vadd.xlane.f32.xlu1 %v87_v8 }
  0xb9   :  { %v89_v9 = vpop.eup %88 }
  0xba   :  { %53 = vadd.xlane.f32.xlu1 %v89_v9 }
 0x13f   :  { %v44_v10 = vpop.xlane.xlu1 %43 }
 0x140   :  { %90 = vrcp.f32 %v44_v10 }
 0x143   :  { %v54_v11 = vpop.xlane.xlu1 %53 }
 0x144   :  { %92 = vrcp.f32 %v54_v11 }
 0x14d   :  { %v91_v12 = vpop.eup %90 }
 0x14e   :  { %v47_v14 = vmul.f32 %v91_v12, %v87_v8 }
 0x151   :  { %v93_v13 = vpop.eup %92 }
 0x152   :  { %v57_v15 = vmul.f32 %v93_v13, %v89_v9 }
 0x154   :  { %v58_v16 = vsub.f32 %v47_v14, %v57_v15 }
 0x156   :  { %v59_v17 = vmul.f32 %v58_v16, %v58_v16 }
 0x158   :  { %v60_v18 = vrot.slane %v59_v17, 4 }
 0x15a   :  { %v61_v19 = vadd.f32 %v60_v18, %v59_v17 }
 0x15c   :  { %v62_v20 = vrot.slane %v61_v19, 2 }
 0x15e   :  { %v63_v21 = vadd.f32 %v62_v20, %v61_v19 }
 0x160   :  { %v64_v22 = vrot.slane %v63_v21, 1 }
 0x162   :  { %v65_v23 = vadd.f32 %v64_v22, %v63_v21 }
 0x164   :  { %66 = vst [vmem:[#allocation7] sm:$0x1] %v65_v23 }
 0x165   :  { %145 = shalt.err (!%p142_p0)
}
 0x166   :  { %76 = dma.vmem_to_hbm [thread:$0]  %s74_s1, 16, %s189_s2, [#allocation4]  }
 0x167   :  { %158 = dma.done.wait [#allocation4], 16  }
 0x168   :  { %159 = vsyncadd [#allocation4], 4294967280 }
 0x169   :  { %80 = vsyncpa [#allocation3], 1 }
 0x16a   :  { %81 = vsyncpa [#allocation6], 1 }
 0x16b   :  { %82 = vsyncpa [#allocation4], 1 }

</bundles_post_ra>
